<compile_context>
chip_gen: v7x
topology: tpu7x:2x2x1
jax: 0.10.0
libtpu: 0.0.40
codegen_flags: <defaults>
</compile_context>

<pallas_src>
import math

import jax
import jax.numpy as jnp
from jax.experimental import pallas as pl
from jax.experimental.pallas import tpu as pltpu


_LANE = 128            # lane width: hidden dims padded to a multiple of this
_SUBLANE_BF16 = 16     # bf16 sublane packing: batch tiles padded to this
_MAX_TB = 8192         # max batch-tile rows (per-step VMEM stays small)
_MIN_GRID_STEPS = 4    # keep >=4 grid steps so v7x dual-TC sharding has work


def _round_up(n, m):
    return ((n + m - 1) // m) * m


def _mlp_kernel(x_ref, w1_ref, b1_ref, w2_ref, b2_ref, w3_ref, b3_ref, o_ref):
    # fc1 + ReLU  (bf16 MXU inputs, f32 accumulate, f32 epilogue)
    h1 = jnp.dot(x_ref[...], w1_ref[...], preferred_element_type=jnp.float32)
    h1 = jnp.maximum(h1 + b1_ref[...], 0.0)
    # fc2 + ReLU
    h2 = jnp.dot(h1.astype(jnp.bfloat16), w2_ref[...],
                 preferred_element_type=jnp.float32)
    h2 = jnp.maximum(h2 + b2_ref[...], 0.0)
    # fc3 (no activation); output block spans the full (unpadded) out dim,
    # so the writeback DMA is a single contiguous transfer.
    out = jnp.dot(h2.astype(jnp.bfloat16), w3_ref[...],
                  preferred_element_type=jnp.float32)
    o_ref[...] = out + b3_ref[...]


def base_model_forward(x, params):
    """Forward pass of BaseModel.

    x: any shape whose total size is divisible by input_features; it is
       flattened to (-1, input_features) (torch's .view(-1, F).float()) and fed
       to the MXU in bf16 with f32 accumulation.
    """
    w1, b1, w2, b2, w3, b3 = params
    input_features = w1.shape[0]
    h0 = w1.shape[1]
    h1d = w2.shape[1]
    out_features = w3.shape[1]

    # --- one-time weight/bias prep: lane-dense hidden dims, VMEM-resident ----
    h0p = _round_up(h0, _LANE)
    h1p = _round_up(h1d, _LANE)
    w1b = jnp.zeros((input_features, h0p), jnp.bfloat16).at[:, :h0].set(
        w1.astype(jnp.bfloat16))
    b1f = jnp.zeros((1, h0p), jnp.float32).at[:, :h0].set(
        b1.astype(jnp.float32).reshape(1, h0))
    w2b = jnp.zeros((h0p, h1p), jnp.bfloat16).at[:h0, :h1d].set(
        w2.astype(jnp.bfloat16))
    b2f = jnp.zeros((1, h1p), jnp.float32).at[:, :h1d].set(
        b2.astype(jnp.float32).reshape(1, h1d))
    w3b = jnp.zeros((h1p, out_features), jnp.bfloat16).at[:h1d, :].set(
        w3.astype(jnp.bfloat16))
    b3f = b3.astype(jnp.float32).reshape(1, out_features)

    # --- activations: flatten + single cast to bf16 (no intermediate f32) ----
    xb = jnp.reshape(x, (-1, input_features)).astype(jnp.bfloat16)
    B = xb.shape[0]

    # Batch tile: sublane-aligned, large enough to amortize per-step overhead,
    # capped so the grid keeps >= _MIN_GRID_STEPS steps (v7x dual-TC sharding).
    TB = min(_MAX_TB,
             _round_up(max(1, pl.cdiv(B, _MIN_GRID_STEPS)), _SUBLANE_BF16))
    B_pad = _round_up(B, TB)
    if B_pad != B:
        # Pad only the ragged tail (zeros -> benign rows, sliced off below).
        xb = jnp.pad(xb, ((0, B_pad - B), (0, 0)))

    grid = (B_pad // TB,)

    flops = 2 * B_pad * (input_features * h0p + h0p * h1p + h1p * out_features)
    bytes_accessed = (
        B_pad * input_features * 2
        + w1b.size * 2 + w2b.size * 2 + w3b.size * 2
        + b1f.size * 4 + b2f.size * 4 + b3f.size * 4
        + B_pad * out_features * 4)

    out = pl.pallas_call(
        _mlp_kernel,
        out_shape=jax.ShapeDtypeStruct((B_pad, out_features), jnp.float32),
        grid=grid,
        in_specs=[
            # batch-tiled activations (double-buffered across the grid)
            pl.BlockSpec((TB, input_features), lambda i: (i, 0)),
            # weights / biases: constant block index -> VMEM-resident, one DMA
            pl.BlockSpec(w1b.shape, lambda i: (0, 0)),
            pl.BlockSpec(b1f.shape, lambda i: (0, 0)),
            pl.BlockSpec(w2b.shape, lambda i: (0, 0)),
            pl.BlockSpec(b2f.shape, lambda i: (0, 0)),
            pl.BlockSpec(w3b.shape, lambda i: (0, 0)),
            pl.BlockSpec(b3f.shape, lambda i: (0, 0)),
        ],
        # Unpadded output lanes: block last dim == full array dim (allowed by
        # the (8,128) rule) -> 8x fewer HBM write bytes than a 128-lane pad.
        out_specs=pl.BlockSpec((TB, out_features), lambda i: (i, 0)),
        compiler_params=pltpu.CompilerParams(
            dimension_semantics=("parallel",),   # shards across v7x's 2 TCs
            vmem_limit_bytes=32 * 1024 * 1024,   # large-tile intermediates on v5e
        ),
        cost_estimate=pl.CostEstimate(
            flops=flops, transcendentals=0, bytes_accessed=bytes_accessed),
    )(xb, w1b, b1f, w2b, b2f, w3b, b3f)

    # Strip batch padding only if we added any (no lane slicing needed).
    return out if B_pad == B else out[:B]


def init_params(key, input_features, output_features, hidden_units):
    """Deterministic init mirroring the PyTorch module's __init__.

    fc1, fc2 weights: kaiming_uniform_(fan_in, relu) -> U(-sqrt(6/fan_in), sqrt(6/fan_in))
    fc3 weight:       PyTorch Linear default -> U(-1/sqrt(fan_in), 1/sqrt(fan_in))
    all biases:       PyTorch Linear default -> U(-1/sqrt(fan_in), 1/sqrt(fan_in))
    Weights are stored transposed: (in, out).
    """
    k = jax.random.split(key, 6)
    h0, h1 = hidden_units

    def kaiming_uniform(k_, fan_in, fan_out):
        bound = math.sqrt(6.0 / fan_in)  # gain=sqrt(2) for relu, * sqrt(3/fan_in)
        return jax.random.uniform(k_, (fan_in, fan_out), jnp.float32, -bound, bound)

    def default_uniform(k_, shape, fan_in):
        bound = 1.0 / math.sqrt(fan_in)
        return jax.random.uniform(k_, shape, jnp.float32, -bound, bound)

    w1 = kaiming_uniform(k[0], input_features, h0)
    b1 = default_uniform(k[1], (1, h0), input_features)
    w2 = kaiming_uniform(k[2], h0, h1)
    b2 = default_uniform(k[3], (1, h1), h0)
    w3 = default_uniform(k[4], (h1, output_features), h1)
    b3 = default_uniform(k[5], (1, output_features), h1)
    return (w1, b1, w2, b2, w3, b3)


if __name__ == "__main__":
    input_features = 32
    output_features = 16
    hidden_units = (64, 32)

    key = jax.random.PRNGKey(0)
    pkey, xkey = jax.random.split(key)
    params = init_params(pkey, input_features, output_features, hidden_units)

    # x of shape (2, 4, 16): 128 elements -> view(-1, 32) gives batch 4,
    # matching the PyTorch forward's x.view(-1, input_features).float().
    x = jax.random.normal(xkey, (2, 4, 16), dtype=jnp.float32)

    out = base_model_forward(x, params)
    out = jax.block_until_ready(out)

    # Pure-JAX reference with the same bf16-rounded MXU inputs (f32 accumulate),
    # so the only residual difference is accumulation order.
    w1, b1, w2, b2, w3, b3 = params
    xr = jnp.reshape(x, (-1, input_features)).astype(jnp.float32)
    xr16 = xr.astype(jnp.bfloat16).astype(jnp.float32)
    w1r = w1.astype(jnp.bfloat16).astype(jnp.float32)
    w2r = w2.astype(jnp.bfloat16).astype(jnp.float32)
    w3r = w3.astype(jnp.bfloat16).astype(jnp.float32)
    ref = jnp.maximum(xr16 @ w1r + b1, 0.0)
    ref = jnp.maximum(ref.astype(jnp.bfloat16).astype(jnp.float32) @ w2r + b2, 0.0)
    ref = ref.astype(jnp.bfloat16).astype(jnp.float32) @ w3r + b3

    assert out.shape == (4, output_features)
    assert jnp.allclose(out, ref, atol=1e-2, rtol=1e-2)

    # Also sanity-check against the full-f32 math (bf16 rounding error is small
    # at these fan-ins).  TODO(synk): keep activations f32 end-to-end if exact
    # f32-Linear parity is ever required (slower MXU path).
    ref_f32 = jnp.maximum(xr @ w1 + b1, 0.0)
    ref_f32 = jnp.maximum(ref_f32 @ w2 + b2, 0.0)
    ref_f32 = ref_f32 @ w3 + b3
    assert jnp.allclose(out, ref_f32, atol=5e-2, rtol=5e-2)

    print("KERNEL_OK")
</pallas_src>

<mosaic_0001>
module attributes {stable_mosaic.version = 11 : i64} {
  func.func @_mlp_kernel(%arg0: i32, %arg1: memref<16x32xbf16, #tpu.memory_space<vmem>>, %arg2: memref<32x128xbf16, #tpu.memory_space<vmem>>, %arg3: memref<1x128xf32, #tpu.memory_space<vmem>>, %arg4: memref<128x128xbf16, #tpu.memory_space<vmem>>, %arg5: memref<1x128xf32, #tpu.memory_space<vmem>>, %arg6: memref<128x16xbf16, #tpu.memory_space<vmem>>, %arg7: memref<1x16xf32, #tpu.memory_space<vmem>>, %arg8: memref<16x16xf32, #tpu.memory_space<vmem>>) attributes {dimension_semantics = [#tpu.dimension_semantics<parallel>], iteration_bounds = array<i64: 1>, scalar_prefetch = 0 : i64, scratch_operands = 0 : i64, tpu.core_type = #tpu.core_type<tc>, window_params = [{transform_indices = @transform_0, window_bounds = array<i64: 16, 32>}, {pipeline_mode = #tpu.pipeline_mode<synchronous>, transform_indices = @transform_1, window_bounds = array<i64: 32, 128>}, {pipeline_mode = #tpu.pipeline_mode<synchronous>, transform_indices = @transform_2, window_bounds = array<i64: 1, 128>}, {pipeline_mode = #tpu.pipeline_mode<synchronous>, transform_indices = @transform_3, window_bounds = array<i64: 128, 128>}, {pipeline_mode = #tpu.pipeline_mode<synchronous>, transform_indices = @transform_4, window_bounds = array<i64: 1, 128>}, {pipeline_mode = #tpu.pipeline_mode<synchronous>, transform_indices = @transform_5, window_bounds = array<i64: 128, 16>}, {pipeline_mode = #tpu.pipeline_mode<synchronous>, transform_indices = @transform_6, window_bounds = array<i64: 1, 16>}, {transform_indices = @transform_7, window_bounds = array<i64: 16, 16>}]} {
    %c0 = arith.constant 0 : index
    %c0_0 = arith.constant 0 : index
    %0 = vector.load %arg1[%c0, %c0_0] : memref<16x32xbf16, #tpu.memory_space<vmem>>, vector<16x32xbf16>
    %c0_1 = arith.constant 0 : index
    %c0_2 = arith.constant 0 : index
    %1 = vector.load %arg2[%c0_1, %c0_2] : memref<32x128xbf16, #tpu.memory_space<vmem>>, vector<32x128xbf16>
    %cst = arith.constant dense<0.000000e+00> : vector<16x128xf32>
    %2 = tpu.matmul %0, %1, %cst {dimension_numbers = #tpu.dot_dimension_numbers<[1], [0], [0], [1], [0, 0, 1, 1], [], []>} : vector<16x32xbf16>, vector<32x128xbf16>, vector<16x128xf32> -> vector<16x128xf32>
    %c0_3 = arith.constant 0 : index
    %c0_4 = arith.constant 0 : index
    %3 = vector.load %arg3[%c0_3, %c0_4] : memref<1x128xf32, #tpu.memory_space<vmem>>, vector<1x128xf32>
    %4 = vector.broadcast %3 : vector<1x128xf32> to vector<16x128xf32>
    %5 = arith.addf %2, %4 : vector<16x128xf32>
    %cst_5 = arith.constant 0.000000e+00 : f32
    %6 = vector.broadcast %cst_5 : f32 to vector<16x128xf32>
    %7 = arith.maximumf %5, %6 : vector<16x128xf32>
    %8 = arith.truncf %7 : vector<16x128xf32> to vector<16x128xbf16>
    %c0_6 = arith.constant 0 : index
    %c0_7 = arith.constant 0 : index
    %9 = vector.load %arg4[%c0_6, %c0_7] : memref<128x128xbf16, #tpu.memory_space<vmem>>, vector<128x128xbf16>
    %cst_8 = arith.constant dense<0.000000e+00> : vector<16x128xf32>
    %10 = tpu.matmul %8, %9, %cst_8 {dimension_numbers = #tpu.dot_dimension_numbers<[1], [0], [0], [1], [0, 0, 1, 1], [], []>} : vector<16x128xbf16>, vector<128x128xbf16>, vector<16x128xf32> -> vector<16x128xf32>
    %c0_9 = arith.constant 0 : index
    %c0_10 = arith.constant 0 : index
    %11 = vector.load %arg5[%c0_9, %c0_10] : memref<1x128xf32, #tpu.memory_space<vmem>>, vector<1x128xf32>
    %12 = vector.broadcast %11 : vector<1x128xf32> to vector<16x128xf32>
    %13 = arith.addf %10, %12 : vector<16x128xf32>
    %cst_11 = arith.constant 0.000000e+00 : f32
    %14 = vector.broadcast %cst_11 : f32 to vector<16x128xf32>
    %15 = arith.maximumf %13, %14 : vector<16x128xf32>
    %16 = arith.truncf %15 : vector<16x128xf32> to vector<16x128xbf16>
    %c0_12 = arith.constant 0 : index
    %c0_13 = arith.constant 0 : index
    %17 = vector.load %arg6[%c0_12, %c0_13] : memref<128x16xbf16, #tpu.memory_space<vmem>>, vector<128x16xbf16>
    %cst_14 = arith.constant dense<0.000000e+00> : vector<16x16xf32>
    %18 = tpu.matmul %16, %17, %cst_14 {dimension_numbers = #tpu.dot_dimension_numbers<[1], [0], [0], [1], [0, 0, 1, 1], [], []>} : vector<16x128xbf16>, vector<128x16xbf16>, vector<16x16xf32> -> vector<16x16xf32>
    %c0_15 = arith.constant 0 : index
    %c0_16 = arith.constant 0 : index
    %19 = vector.load %arg7[%c0_15, %c0_16] : memref<1x16xf32, #tpu.memory_space<vmem>>, vector<1x16xf32>
    %20 = vector.broadcast %19 : vector<1x16xf32> to vector<16x16xf32>
    %21 = arith.addf %18, %20 : vector<16x16xf32>
    %c0_17 = arith.constant 0 : index
    %c0_18 = arith.constant 0 : index
    %22 = vector.load %arg8[%c0_17, %c0_18] : memref<16x16xf32, #tpu.memory_space<vmem>>, vector<16x16xf32>
    tpu.vector_store %arg8[%c0_17, %c0_18], %21 {strides = array<i32>} : memref<16x16xf32, #tpu.memory_space<vmem>>, vector<16x16xf32>,
    return
  }
  func.func @transform_0(%arg0: i32) -> (i32, i32) {
    %c0_i32 = arith.constant 0 : i32
    %c0_i32_0 = arith.constant 0 : i32
    return %arg0, %c0_i32 : i32, i32
  }
  func.func @transform_1(%arg0: i32) -> (i32, i32) {
    %c0_i32 = arith.constant 0 : i32
    %c0_i32_0 = arith.constant 0 : i32
    %c0_i32_1 = arith.constant 0 : i32
    return %c0_i32, %c0_i32_0 : i32, i32
  }
  func.func @transform_2(%arg0: i32) -> (i32, i32) {
    %c0_i32 = arith.constant 0 : i32
    %c0_i32_0 = arith.constant 0 : i32
    %c0_i32_1 = arith.constant 0 : i32
    return %c0_i32, %c0_i32_0 : i32, i32
  }
  func.func @transform_3(%arg0: i32) -> (i32, i32) {
    %c0_i32 = arith.constant 0 : i32
    %c0_i32_0 = arith.constant 0 : i32
    %c0_i32_1 = arith.constant 0 : i32
    return %c0_i32, %c0_i32_0 : i32, i32
  }
  func.func @transform_4(%arg0: i32) -> (i32, i32) {
    %c0_i32 = arith.constant 0 : i32
    %c0_i32_0 = arith.constant 0 : i32
    %c0_i32_1 = arith.constant 0 : i32
    return %c0_i32, %c0_i32_0 : i32, i32
  }
  func.func @transform_5(%arg0: i32) -> (i32, i32) {
    %c0_i32 = arith.constant 0 : i32
    %c0_i32_0 = arith.constant 0 : i32
    %c0_i32_1 = arith.constant 0 : i32
    return %c0_i32, %c0_i32_0 : i32, i32
  }
  func.func @transform_6(%arg0: i32) -> (i32, i32) {
    %c0_i32 = arith.constant 0 : i32
    %c0_i32_0 = arith.constant 0 : i32
    %c0_i32_1 = arith.constant 0 : i32
    return %c0_i32, %c0_i32_0 : i32, i32
  }
  func.func @transform_7(%arg0: i32) -> (i32, i32) {
    %c0_i32 = arith.constant 0 : i32
    %c0_i32_0 = arith.constant 0 : i32
    return %arg0, %c0_i32 : i32, i32
  }
}

</mosaic_0001>

<bundles_post_ra>
// kernel: tpu_custom_call.1
= control target key start
LH: loop header
LB: loop body
LE: loop exit
PB: predicated region body
PF: predicated region fallthrough
CT: control target
= control target key end

     0   :  { %12 = vsyncpa [#allocation3], 0  ;;  %s693_s0 = inlined_call_operand.hbm [shape: bf16[16,32], index: 0, kind: input, shape index: {}]   ;;  %s694_s1 = inlined_call_operand.vmem [shape: bf16[32,128], index: 1, kind: input, shape index: {}]   ;;  %s695_s2 = inlined_call_operand.vmem [shape: f32[1,128], index: 2, kind: input, shape index: {}]   ;;  %s696_s3 = inlined_call_operand.vmem [shape: bf16[128,128], index: 3, kind: input, shape index: {}]   ;;  %s697_s4 = inlined_call_operand.vmem [shape: f32[1,128], index: 4, kind: input, shape index: {}]   ;;  %s698_s5 = inlined_call_operand.vmem [shape: bf16[128,16], index: 5, kind: input, shape index: {}]   ;;  %s699_s6 = inlined_call_operand.vmem [shape: f32[1,16], index: 6, kind: input, shape index: {}]   ;;  %s700_s7 = inlined_call_operand.hbm [shape: f32[16,16], index: 7, kind: output, shape index: {}]  }
   0x1   :  { %13 = vsyncpa [#allocation4], 0  ;;  %s534_s24 = smov [#allocation2]   ;;  %s486_s28 = scalar_lea.hbm %s693_s0, 128 }
   0x2   :  { %s19_s25 = sshll.u32 %s534_s24, 4  ;;  %p487_p0 = scmp.ne.s32.totalorder %s693_s0, %s486_s28  ;;  %s20_s25 = int_to_ptr.vmem [resolvable:$true] %s19_s25 }
   0x3   :  { %p490_p1 = scmp.lt.u32.totalorder %s486_s28, %s693_s0 }
   0x5   :  { %p492_p2 = pnand %p490_p1, %p487_p0 }
   0x7   :  { %495 = shalt.err (!%p492_p2)
}
   0x8   :  { %s496_s10 = scalar_lea.vmem %s20_s25, 128  ;;  %p501_p4 = scmp.lt.s32.totalorder %s20_s25, %s20_s25 }
   0x9   :  { %p497_p3 = scmp.ne.s32.totalorder %s20_s25, %s496_s10  ;;  %p502_p5 = scmp.lt.s32.totalorder %s496_s10, %s496_s10 }
   0xb   :  { %p503_p6 = por %p502_p5, %p501_p4 }
   0xd   :  { %p504_p7 = pnand %p503_p6, %p497_p3 }
   0xf   :  { %507 = shalt.err (!%p504_p7)
}
  0x10   :  { %s535_s11 = smov 64   ;;  %s536_s12 = smov 4  }
  0x11   :  { %25 = dma.hbm_to_vmem [thread:$0]  %s693_s0, 128, %s20_s25, [#allocation3], %s535_s11, %s535_s11, %s536_s12  }
  0x12   :  { %530 = dma.done.wait [#allocation3], 128  }
  0x13   :  { %531 = vsyncadd [#allocation3], 4294967168  ;;  %v537_v0 = vmov 0.0   ;;  %vm538_vm0 = vmmov 0   ;;  %v467_v1 = vld [vmem:[%s694_s1] sm:$0xff]   ;;  %v468_v2 = vld [vmem:[%s694_s1 + $0x8] sm:$0xff]  }
  0x14   :  { %411 = vmatprep.subr.bf16.mxu0 %v537_v0  ;;  %415 = vmatprep.mubr.msk.bf16.mxu0 %vm538_vm0, %v537_v0  ;;  %v470_v3 = vld [vmem:[%s696_s3] sm:$0xff]   ;;  %v471_v5 = vld [vmem:[%s696_s3 + $0x8] sm:$0xff]   ;;  %vm72_vm1 = vcmask 261120   ;;  %v472_v6 = vld [vmem:[%s696_s3 + $0x10] sm:$0xff]   ;;  %vm347_vm2 = vcmask 130048  }
  0x15   :  { %419 = vmatprep.subr.bf16.mxu1 %v537_v0  ;;  %435 = vmatprep.mubr.msk.bf16.mxu1 %vm538_vm0, %v537_v0  ;;  %v469_v4 = vld [vmem:[#allocation2] sm:$0xff]   ;;  %v473_v7 = vld [vmem:[%s696_s3 + $0x18] sm:$0xff]   ;;  %v475_v9 = vld [vmem:[%s696_s3 + $0x28] sm:$0xff]  }
  0x16   :  { %412 = vmatpush3.bf16.msra.mxu0 %v467_v1  ;;  %420 = vmatpush3.bf16.msra.mxu1 %v470_v3  ;;  %v474_v8 = vld [vmem:[%s696_s3 + $0x20] sm:$0xff]   ;;  %v476_v10 = vld [vmem:[%s696_s3 + $0x30] sm:$0xff]   ;;  %v477_v11 = vld [vmem:[%s696_s3 + $0x38] sm:$0xff]  }
  0x17   :  { %413 = vmatprep.subr.bf16.mxu0 %v537_v0  ;;  %421 = vmatprep.subr.bf16.mxu1 %v537_v0  ;;  %v478_v12 = vld [vmem:[%s698_s5] sm:$0xff]   ;;  %v479_v13 = vld [vmem:[%s698_s5 + $0x8] sm:$0xff]   ;;  %v480_v14 = vld [vmem:[%s698_s5 + $0x10] sm:$0xff]  }
  0x18   :  { %v481_v15 = vld [vmem:[%s698_s5 + $0x18] sm:$0xff]   ;;  %v482_v16 = vld [vmem:[%s698_s5 + $0x20] sm:$0xff]   ;;  %v483_v17 = vld [vmem:[%s698_s5 + $0x28] sm:$0xff]  }
  0x19   :  { %v367_v18 = vld [vmem:[%s695_s2] ss:$0 sm:$0xff]  ;;  %v484_v28 = vld [vmem:[%s698_s5 + $0x30] sm:$0xff]   ;;  %v485_v29 = vld [vmem:[%s698_s5 + $0x38] sm:$0xff]   ;;  %s539_s5 = smov [#allocation5]  }
  0x1a   :  { %414 = vmatpush3.bf16.msra.mxu0 %v468_v2  ;;  %422 = vmatpush3.bf16.msra.mxu1 %v471_v5  ;;  %v372_v30 = vld [vmem:[%s697_s4] ss:$0 sm:$0xff]  ;;  %s355_s28 = sshll.u32 %s539_s5, 4  ;;  %s356_s28 = int_to_ptr.vmem [resolvable:$true] %s355_s28 }
  0x1b   :  { %439 = vmatprep.subr.bf16.mxu0 %v537_v0  ;;  %423 = vmatprep.subr.bf16.mxu1 %v537_v0  ;;  %v381_v40 = vld [vmem:[%s699_s6] ss:$0 sm:$0xff]  ;;  %s508_s4 = scalar_lea.vmem %s356_s28, 256  ;;  %p513_p9 = scmp.lt.s32.totalorder %s356_s28, %s356_s28 }
  0x1c   :  { %p509_p8 = scmp.ne.s32.totalorder %s356_s28, %s508_s4  ;;  %p514_p10 = scmp.lt.s32.totalorder %s508_s4, %s508_s4 }
  0x1d   :  { %416 = vmatmul.mubr.msk.bf16.vlgmr.msra.gmra.mrb[0].mxu0 %vm72_vm1, %v469_v4 }
  0x1e   :  { %455 = vmatprep.mubr.msk.bf16.mxu0 %vm538_vm0, %v537_v0  ;;  %424 = vmatpush3.bf16.msra.mxu1 %v472_v6  ;;  %p515_p11 = por %p514_p10, %p513_p9 }
  0x1f   :  { %425 = vmatprep.subr.bf16.mxu1 %v537_v0  ;;  %440 = vmatpush3.bf16.msra.mxu0 %v478_v12 }
  0x20   :  { %441 = vmatprep.subr.bf16.mxu0 %v537_v0  ;;  %p516_p12 = pnand %p515_p11, %p509_p8 }
  0x22   :  { %426 = vmatpush3.bf16.msra.mxu1 %v473_v7 }
  0x23   :  { %427 = vmatprep.subr.bf16.mxu1 %v537_v0  ;;  %442 = vmatpush3.bf16.msra.mxu0 %v479_v13 }
  0x24   :  { %443 = vmatprep.subr.bf16.mxu0 %v537_v0 }
  0x26   :  { %428 = vmatpush3.bf16.msra.mxu1 %v474_v8 }
  0x27   :  { %429 = vmatprep.subr.bf16.mxu1 %v537_v0  ;;  %444 = vmatpush3.bf16.msra.mxu0 %v480_v14 }
  0x28   :  { %445 = vmatprep.subr.bf16.mxu0 %v537_v0 }
  0x2a   :  { %430 = vmatpush3.bf16.msra.mxu1 %v475_v9 }
  0x2b   :  { %431 = vmatprep.subr.bf16.mxu1 %v537_v0  ;;  %446 = vmatpush3.bf16.msra.mxu0 %v481_v15 }
  0x2c   :  { %447 = vmatprep.subr.bf16.mxu0 %v537_v0 }
  0x2e   :  { %432 = vmatpush3.bf16.msra.mxu1 %v476_v10 }
  0x2f   :  { %433 = vmatprep.subr.bf16.mxu1 %v537_v0  ;;  %448 = vmatpush3.bf16.msra.mxu0 %v482_v16 }
  0x30   :  { %449 = vmatprep.subr.bf16.mxu0 %v537_v0 }
  0x32   :  { %434 = vmatpush3.bf16.msra.mxu1 %v477_v11 }
  0x33   :  { %450 = vmatpush3.bf16.msra.mxu0 %v483_v17 }
  0x34   :  { %451 = vmatprep.subr.bf16.mxu0 %v537_v0 }
  0x37   :  { %452 = vmatpush3.bf16.msra.mxu0 %v484_v28 }
  0x38   :  { %453 = vmatprep.subr.bf16.mxu0 %v537_v0 }
  0x3b   :  { %454 = vmatpush3.bf16.msra.mxu0 %v485_v29 }
  0xf0   :  { %v110_v19 = vpop.f32.mrb[0].mxu0 }
  0xf1   :  { %v111_v20 = vadd.f32 %v367_v18, %v110_v19  ;;  %v417_v21 = vpop.f32.mrb[1].mxu0 }
  0xf2   :  { %v113_v22 = vpop.f32.mrb[2].mxu0 }
  0xf3   :  { %v114_v23 = vadd.f32 %v367_v18, %v113_v22  ;;  %v418_v24 = vpop.f32.mrb[3].mxu0  ;;  %v117_v25 = vmax.f32 %v111_v20, 0.0 }
  0xf5   :  { %v118_v26 = vmax.f32 %v114_v23, 0.0 }
  0xf7   :  { %v119_v27 = vpack.c.bf16 %v118_v26, %v117_v25 }
  0xf9   :  { %436 = vmatmul.mubr.bf16.vlgmr.msra.gmra.mrb[0].mxu1 %v119_v27 }
 0x1cc   :  { %v225_v31 = vpop.f32.mrb[0].mxu1 }
 0x1cd   :  { %v226_v32 = vadd.f32 %v372_v30, %v225_v31  ;;  %v437_v33 = vpop.f32.mrb[1].mxu1 }
 0x1ce   :  { %v228_v34 = vpop.f32.mrb[2].mxu1 }
 0x1cf   :  { %v229_v35 = vadd.f32 %v372_v30, %v228_v34  ;;  %v438_v36 = vpop.f32.mrb[3].mxu1  ;;  %v232_v37 = vmax.f32 %v226_v32, 0.0 }
 0x1d1   :  { %v233_v38 = vmax.f32 %v229_v35, 0.0 }
 0x1d3   :  { %v234_v39 = vpack.c.bf16 %v233_v38, %v232_v37 }
 0x1d5   :  { %456 = vmatmul.mubr.bf16.vlgmr.msra.gmra.mrb[4].mxu0 %v234_v39 }
 0x2a8   :  { %v340_v41 = vpop.f32.mrb[4].mxu0 }
 0x2a9   :  { %v341_v42 = vadd.f32 %v381_v40, %v340_v41  ;;  %v457_v43 = vpop.f32.mrb[5].mxu0 }
 0x2aa   :  { %v343_v44 = vpop.f32.mrb[6].mxu0 }
 0x2ab   :  { %348 = vst.msk [vmem:[#allocation5] sm:$0xff] %vm347_vm2, %v341_v42  ;;  %v344_v45 = vadd.f32 %v381_v40, %v343_v44  ;;  %v458_v46 = vpop.f32.mrb[7].mxu0 }
 0x2ad   :  { %349 = vst.msk [vmem:[#allocation5 + $0x8] sm:$0xff] %vm347_vm2, %v344_v45 }
 0x2ae   :  { %519 = shalt.err (!%p516_p12)
}
 0x2af   :  { %s520_s30 = scalar_lea.hbm %s700_s7, 256 }
 0x2b0   :  { %p521_p13 = scmp.ne.s32.totalorder %s700_s7, %s520_s30  ;;  %p524_p0 = scmp.lt.u32.totalorder %s520_s30, %s700_s7 }
 0x2b2   :  { %p526_p1 = pnand %p524_p0, %p521_p13 }
 0x2b4   :  { %529 = shalt.err (!%p526_p1)
}
 0x2b5   :  { %s540_s12 = smov 128   ;;  %s541_s13 = smov 8  }
 0x2b6   :  { %361 = dma.vmem_to_hbm [thread:$0]  %s356_s28, 256, %s700_s7, [#allocation4], %s540_s12, %s540_s12, %s541_s13  }
 0x2b7   :  { %532 = dma.done.wait [#allocation4], 256  }
 0x2b8   :  { %533 = vsyncadd [#allocation4], 4294967040 }
 0x2b9   :  { %365 = vsyncpa [#allocation3], 1 }
 0x2ba   :  { %366 = vsyncpa [#allocation4], 1 }

</bundles_post_ra>
